<compile_context>
chip_gen: v7x
topology: tpu7x:2x2x1
jax: 0.10.0
libtpu: 0.0.40
codegen_flags: <defaults>
</compile_context>

<pallas_src>
import functools

import jax
import jax.numpy as jnp
from jax.experimental import pallas as pl
from jax.experimental.pallas import tpu as pltpu


def _round_up(n, m):
    return (n + m - 1) // m * m


def _default_act_dtype():
    """bf16 activations on chips with a bf16 VPU/EUP (v6e/v7x), else f32."""
    try:
        kind = jax.devices()[0].device_kind.lower()
    except Exception:
        return jnp.float32
    if any(v in kind for v in ("v2", "v3", "v4", "v5")):
        return jnp.float32
    return jnp.bfloat16


def _fcn_kernel(x_ref, w1_ref, b1_ref, w2_ref, b2_ref, w3_ref, b3_ref, o_ref,
                *, act_dtype):
    # In-kernel cast: x block arrives as f32, goes to the MXU as bf16.
    x = x_ref[...].astype(jnp.bfloat16)                       # (TB, 13)

    # fc1 + sigmoid (f32 accumulation; sigmoid in act_dtype).
    h1 = jnp.dot(x, w1_ref[...], preferred_element_type=jnp.float32)
    h1 = jax.nn.sigmoid((h1 + b1_ref[...]).astype(act_dtype))
    h1 = h1.astype(jnp.bfloat16)                              # (TB, 64)

    # fc2 with AvgPool1d(2,2) folded into its weights, + sigmoid.
    h2 = jnp.dot(h1, w2_ref[...], preferred_element_type=jnp.float32)
    h2 = jax.nn.sigmoid((h2 + b2_ref[...]).astype(act_dtype))
    h2 = h2.astype(jnp.bfloat16)                              # (TB, 128)

    # fc3 + softplus (numerically stable logaddexp(z, 0), f32).
    z = jnp.dot(h2, w3_ref[...], preferred_element_type=jnp.float32)
    z = z + b3_ref[...]                                       # (TB, 2) f32
    o_ref[...] = jnp.logaddexp(z, 0.0)


def heart_disease_fcn(x, kparams, *, block_b=2048, act_dtype=None):
    """x: (B, 13) float32.  kparams: output of prepare_kernel_params()."""
    B = x.shape[0]
    if act_dtype is None:
        act_dtype = _default_act_dtype()

    # Batch tile: multiple of 8 (f32 sublane), capped at block_b / batch size.
    tb = min(_round_up(block_b, 16), _round_up(B, 8))
    # If the whole batch fits in one tile, split so the grid has >= 2 steps
    # and the "parallel" axis can use both TensorCores on v7x.
    if B >= 16 and pl.cdiv(B, tb) < 2:
        tb = _round_up(pl.cdiv(B, 2), 8)
    grid = (pl.cdiv(B, tb),)

    w1t, b1, w2f, b2, w3t, b3 = (
        kparams["w1t"], kparams["b1"], kparams["w2f"],
        kparams["b2"], kparams["w3t"], kparams["b3"])

    const = lambda i: (0, 0)   # weights / biases: same block every grid step
    kernel = functools.partial(_fcn_kernel, act_dtype=act_dtype)

    return pl.pallas_call(
        kernel,
        out_shape=jax.ShapeDtypeStruct((B, 2), jnp.float32),
        grid=grid,
        in_specs=[
            pl.BlockSpec((tb, 13), lambda i: (i, 0)),   # x: batch-tiled (f32)
            pl.BlockSpec((13, 64), const),              # W1^T          (bf16)
            pl.BlockSpec((1, 64), const),               # b1            (f32)
            pl.BlockSpec((64, 128), const),             # pool @ W2^T   (bf16)
            pl.BlockSpec((1, 128), const),              # b2            (f32)
            pl.BlockSpec((128, 2), const),              # W3^T          (bf16)
            pl.BlockSpec((1, 2), const),                # b3            (f32)
        ],
        out_specs=pl.BlockSpec((tb, 2), lambda i: (i, 0)),
        compiler_params=pltpu.CompilerParams(
            dimension_semantics=("parallel",)),
    )(x, w1t, b1, w2f, b2, w3t, b3)


def init_params(key):
    """Deterministic f32 parameters matching the PyTorch module shapes."""
    k1, k2, k3, k4, k5, k6 = jax.random.split(key, 6)
    return {
        "w1": jax.random.normal(k1, (64, 13), jnp.float32) * 0.1,
        "b1": jax.random.normal(k2, (64,), jnp.float32) * 0.1,
        "w2": jax.random.normal(k3, (128, 32), jnp.float32) * 0.1,
        "b2": jax.random.normal(k4, (128,), jnp.float32) * 0.1,
        "w3": jax.random.normal(k5, (2, 128), jnp.float32) * 0.1,
        "b3": jax.random.normal(k6, (2,), jnp.float32) * 0.1,
    }


def prepare_kernel_params(params):
    """Transpose to (in, out), fold AvgPool1d(2,2) into fc2, cast weights to bf16.

    The pool fold is exact (done in f32); the bf16 weight cast is a deliberate
    precision trade-off well within the 5e-2 test tolerance.
    """
    # AvgPool1d(k=2, s=2) over 64 features as a (64, 32) matrix of 0.5 entries.
    idx = jnp.arange(64)
    pool = jnp.zeros((64, 32), jnp.float32).at[idx, idx // 2].set(0.5)
    w2f = pool @ params["w2"].T                               # (64, 128) f32
    return {
        "w1t": params["w1"].T.astype(jnp.bfloat16),           # (13, 64)
        "b1": params["b1"].reshape(1, 64),                    # f32
        "w2f": w2f.astype(jnp.bfloat16),                      # (64, 128)
        "b2": params["b2"].reshape(1, 128),                   # f32
        "w3t": params["w3"].T.astype(jnp.bfloat16),           # (128, 2)
        "b3": params["b3"].reshape(1, 2),                     # f32
    }


def _reference(x, params):
    """Plain-JAX f32 reference mirroring the PyTorch forward exactly."""
    h = jax.nn.sigmoid(x @ params["w1"].T + params["b1"])     # (B, 64)
    h = h.reshape(h.shape[0], 32, 2).mean(-1)                 # AvgPool1d(2, 2)
    h = jax.nn.sigmoid(h @ params["w2"].T + params["b2"])     # (B, 128)
    z = h @ params["w3"].T + params["b3"]                     # (B, 2)
    return jax.nn.softplus(z)


if __name__ == "__main__":
    key = jax.random.PRNGKey(0)
    pkey, xkey1, xkey2 = jax.random.split(key, 3)
    params = init_params(pkey)
    kparams = prepare_kernel_params(params)

    # Case 1: small batch (single tile, no masking).
    B1 = 8
    x1 = jax.random.normal(xkey1, (B1, 13), jnp.float32)
    out1 = jax.block_until_ready(heart_disease_fcn(x1, kparams))
    ref1 = _reference(x1, params)
    assert out1.shape == (B1, 2)
    assert jnp.allclose(out1, ref1, atol=5e-2, rtol=5e-2)

    # Case 2: multi-step grid with a ragged tail (B=50, tile=16 -> 4 steps,
    # last block has 2 valid rows; tail rows are masked by Pallas).
    B2 = 50
    x2 = jax.random.normal(xkey2, (B2, 13), jnp.float32)
    out2 = jax.block_until_ready(heart_disease_fcn(x2, kparams, block_b=16))
    ref2 = _reference(x2, params)
    assert out2.shape == (B2, 2)
    assert jnp.allclose(out2, ref2, atol=5e-2, rtol=5e-2)

    print("KERNEL_OK")
</pallas_src>

<mosaic_0001>
module attributes {stable_mosaic.version = 11 : i64} {
  func.func @_fcn_kernel(%arg0: i32, %arg1: memref<8x13xf32, #tpu.memory_space<vmem>>, %arg2: memref<13x64xbf16, #tpu.memory_space<vmem>>, %arg3: memref<1x64xf32, #tpu.memory_space<vmem>>, %arg4: memref<64x128xbf16, #tpu.memory_space<vmem>>, %arg5: memref<1x128xf32, #tpu.memory_space<vmem>>, %arg6: memref<128x2xbf16, #tpu.memory_space<vmem>>, %arg7: memref<1x2xf32, #tpu.memory_space<vmem>>, %arg8: memref<8x2xf32, #tpu.memory_space<vmem>>) attributes {dimension_semantics = [#tpu.dimension_semantics<parallel>], iteration_bounds = array<i64: 1>, scalar_prefetch = 0 : i64, scratch_operands = 0 : i64, tpu.core_type = #tpu.core_type<tc>, window_params = [{transform_indices = @transform_0, window_bounds = array<i64: 8, 13>}, {pipeline_mode = #tpu.pipeline_mode<synchronous>, transform_indices = @transform_1, window_bounds = array<i64: 13, 64>}, {pipeline_mode = #tpu.pipeline_mode<synchronous>, transform_indices = @transform_2, window_bounds = array<i64: 1, 64>}, {pipeline_mode = #tpu.pipeline_mode<synchronous>, transform_indices = @transform_3, window_bounds = array<i64: 64, 128>}, {pipeline_mode = #tpu.pipeline_mode<synchronous>, transform_indices = @transform_4, window_bounds = array<i64: 1, 128>}, {pipeline_mode = #tpu.pipeline_mode<synchronous>, transform_indices = @transform_5, window_bounds = array<i64: 128, 2>}, {pipeline_mode = #tpu.pipeline_mode<synchronous>, transform_indices = @transform_6, window_bounds = array<i64: 1, 2>}, {transform_indices = @transform_7, window_bounds = array<i64: 8, 2>}]} {
    %c0 = arith.constant 0 : index
    %c0_0 = arith.constant 0 : index
    %0 = vector.load %arg1[%c0, %c0_0] : memref<8x13xf32, #tpu.memory_space<vmem>>, vector<8x13xf32>
    %1 = arith.truncf %0 : vector<8x13xf32> to vector<8x13xbf16>
    %c0_1 = arith.constant 0 : index
    %c0_2 = arith.constant 0 : index
    %2 = vector.load %arg2[%c0_1, %c0_2] : memref<13x64xbf16, #tpu.memory_space<vmem>>, vector<13x64xbf16>
    %cst = arith.constant dense<0.000000e+00> : vector<8x64xf32>
    %3 = tpu.matmul %1, %2, %cst {dimension_numbers = #tpu.dot_dimension_numbers<[1], [0], [0], [1], [0, 0, 1, 1], [], []>} : vector<8x13xbf16>, vector<13x64xbf16>, vector<8x64xf32> -> vector<8x64xf32>
    %c0_3 = arith.constant 0 : index
    %c0_4 = arith.constant 0 : index
    %4 = vector.load %arg3[%c0_3, %c0_4] : memref<1x64xf32, #tpu.memory_space<vmem>>, vector<1x64xf32>
    %5 = vector.broadcast %4 : vector<1x64xf32> to vector<8x64xf32>
    %6 = arith.addf %3, %5 : vector<8x64xf32>
    %7 = arith.truncf %6 : vector<8x64xf32> to vector<8x64xbf16>
    %8 = arith.negf %7 : vector<8x64xbf16>
    %9 = math.exp %8 : vector<8x64xbf16>
    %cst_5 = arith.constant 1.000000e+00 : bf16
    %10 = vector.broadcast %cst_5 : bf16 to vector<8x64xbf16>
    %11 = arith.addf %10, %9 : vector<8x64xbf16>
    %12 = arith.divf %10, %11 : vector<8x64xbf16>
    %c0_6 = arith.constant 0 : index
    %c0_7 = arith.constant 0 : index
    %13 = vector.load %arg4[%c0_6, %c0_7] : memref<64x128xbf16, #tpu.memory_space<vmem>>, vector<64x128xbf16>
    %cst_8 = arith.constant dense<0.000000e+00> : vector<8x128xf32>
    %14 = tpu.matmul %12, %13, %cst_8 {dimension_numbers = #tpu.dot_dimension_numbers<[1], [0], [0], [1], [0, 0, 1, 1], [], []>} : vector<8x64xbf16>, vector<64x128xbf16>, vector<8x128xf32> -> vector<8x128xf32>
    %c0_9 = arith.constant 0 : index
    %c0_10 = arith.constant 0 : index
    %15 = vector.load %arg5[%c0_9, %c0_10] : memref<1x128xf32, #tpu.memory_space<vmem>>, vector<1x128xf32>
    %16 = vector.broadcast %15 : vector<1x128xf32> to vector<8x128xf32>
    %17 = arith.addf %14, %16 : vector<8x128xf32>
    %18 = arith.truncf %17 : vector<8x128xf32> to vector<8x128xbf16>
    %19 = arith.negf %18 : vector<8x128xbf16>
    %20 = math.exp %19 : vector<8x128xbf16>
    %cst_11 = arith.constant 1.000000e+00 : bf16
    %21 = vector.broadcast %cst_11 : bf16 to vector<8x128xbf16>
    %22 = arith.addf %21, %20 : vector<8x128xbf16>
    %23 = arith.divf %21, %22 : vector<8x128xbf16>
    %c0_12 = arith.constant 0 : index
    %c0_13 = arith.constant 0 : index
    %24 = vector.load %arg6[%c0_12, %c0_13] : memref<128x2xbf16, #tpu.memory_space<vmem>>, vector<128x2xbf16>
    %cst_14 = arith.constant dense<0.000000e+00> : vector<8x2xf32>
    %25 = tpu.matmul %23, %24, %cst_14 {dimension_numbers = #tpu.dot_dimension_numbers<[1], [0], [0], [1], [0, 0, 1, 1], [], []>} : vector<8x128xbf16>, vector<128x2xbf16>, vector<8x2xf32> -> vector<8x2xf32>
    %c0_15 = arith.constant 0 : index
    %c0_16 = arith.constant 0 : index
    %26 = vector.load %arg7[%c0_15, %c0_16] : memref<1x2xf32, #tpu.memory_space<vmem>>, vector<1x2xf32>
    %27 = vector.broadcast %26 : vector<1x2xf32> to vector<8x2xf32>
    %28 = arith.addf %25, %27 : vector<8x2xf32>
    %cst_17 = arith.constant 0.000000e+00 : f32
    %29 = vector.broadcast %cst_17 : f32 to vector<8x2xf32>
    %30 = arith.maximumf %28, %29 : vector<8x2xf32>
    %31 = vector.broadcast %cst_17 : f32 to vector<8x2xf32>
    %32 = arith.subf %28, %31 : vector<8x2xf32>
    %33 = arith.cmpf one, %32, %32 : vector<8x2xf32>
    %34 = vector.broadcast %cst_17 : f32 to vector<8x2xf32>
    %35 = arith.addf %28, %34 : vector<8x2xf32>
    %36 = math.absf %32 : vector<8x2xf32>
    %cst_18 = arith.constant 0.000000e+00 : f32
    %37 = vector.broadcast %cst_18 : f32 to vector<8x2xf32>
    %38 = arith.subf %37, %36 : vector<8x2xf32>
    %39 = math.exp %38 : vector<8x2xf32>
    %40 = math.log1p %39 : vector<8x2xf32>
    %41 = arith.addf %30, %40 : vector<8x2xf32>
    %42 = arith.select %33, %35, %41 : vector<8x2xi1>, vector<8x2xf32>
    %c0_19 = arith.constant 0 : index
    %c0_20 = arith.constant 0 : index
    %43 = vector.load %arg8[%c0_19, %c0_20] : memref<8x2xf32, #tpu.memory_space<vmem>>, vector<8x2xf32>
    tpu.vector_store %arg8[%c0_19, %c0_20], %42 {strides = array<i32>} : memref<8x2xf32, #tpu.memory_space<vmem>>, vector<8x2xf32>,
    return
  }
  func.func @transform_0(%arg0: i32) -> (i32, i32) {
    %c0_i32 = arith.constant 0 : i32
    %c0_i32_0 = arith.constant 0 : i32
    return %arg0, %c0_i32 : i32, i32
  }
  func.func @transform_1(%arg0: i32) -> (i32, i32) {
    %c0_i32 = arith.constant 0 : i32
    %c0_i32_0 = arith.constant 0 : i32
    %c0_i32_1 = arith.constant 0 : i32
    return %c0_i32, %c0_i32_0 : i32, i32
  }
  func.func @transform_2(%arg0: i32) -> (i32, i32) {
    %c0_i32 = arith.constant 0 : i32
    %c0_i32_0 = arith.constant 0 : i32
    %c0_i32_1 = arith.constant 0 : i32
    return %c0_i32, %c0_i32_0 : i32, i32
  }
  func.func @transform_3(%arg0: i32) -> (i32, i32) {
    %c0_i32 = arith.constant 0 : i32
    %c0_i32_0 = arith.constant 0 : i32
    %c0_i32_1 = arith.constant 0 : i32
    return %c0_i32, %c0_i32_0 : i32, i32
  }
  func.func @transform_4(%arg0: i32) -> (i32, i32) {
    %c0_i32 = arith.constant 0 : i32
    %c0_i32_0 = arith.constant 0 : i32
    %c0_i32_1 = arith.constant 0 : i32
    return %c0_i32, %c0_i32_0 : i32, i32
  }
  func.func @transform_5(%arg0: i32) -> (i32, i32) {
    %c0_i32 = arith.constant 0 : i32
    %c0_i32_0 = arith.constant 0 : i32
    %c0_i32_1 = arith.constant 0 : i32
    return %c0_i32, %c0_i32_0 : i32, i32
  }
  func.func @transform_6(%arg0: i32) -> (i32, i32) {
    %c0_i32 = arith.constant 0 : i32
    %c0_i32_0 = arith.constant 0 : i32
    %c0_i32_1 = arith.constant 0 : i32
    return %c0_i32, %c0_i32_0 : i32, i32
  }
  func.func @transform_7(%arg0: i32) -> (i32, i32) {
    %c0_i32 = arith.constant 0 : i32
    %c0_i32_0 = arith.constant 0 : i32
    return %arg0, %c0_i32 : i32, i32
  }
}

</mosaic_0001>

<bundles_post_ra>
// kernel: tpu_custom_call.1
= control target key start
LH: loop header
LB: loop body
LE: loop exit
PB: predicated region body
PF: predicated region fallthrough
CT: control target
= control target key end

     0   :  { %vm48_vm0 = vcmask 1045504   ;;  %vm49_vm1 = vcmask 1046528   ;;  %v431_v0 = vmov 0.0   ;;  %v432_v2 = vmov 65535   ;;  %s544_s1 = inlined_call_operand.vmem [shape: bf16[13,64], index: 1, kind: input, shape index: {}]   ;;  %s545_s0 = inlined_call_operand.vmem [shape: f32[8,13], index: 0, kind: input, shape index: {}]   ;;  %s546_s3 = inlined_call_operand.vmem [shape: bf16[64,128], index: 3, kind: input, shape index: {}]   ;;  %s547_s2 = inlined_call_operand.vmem [shape: f32[1,64], index: 2, kind: input, shape index: {}]   ;;  %s548_s5 = inlined_call_operand.vmem [shape: bf16[128,2], index: 5, kind: input, shape index: {}]   ;;  %s549_s4 = inlined_call_operand.vmem [shape: f32[1,128], index: 4, kind: input, shape index: {}]   ;;  %s550_s6 = inlined_call_operand.vmem [shape: f32[1,2], index: 6, kind: input, shape index: {}]   ;;  %s551_s7 = inlined_call_operand.vmem [shape: f32[8,2], index: 7, kind: output, shape index: {}]  }
   0x1   :  { %365 = vmatprep.subr.bf16.mxu1 %v431_v0  ;;  %v406_v1 = vld [vmem:[%s544_s1] sm:$0x7f]   ;;  %383 = vmatprep.subr.bf16.mxu0 %v431_v0  ;;  %v50_v3 = vsel %vm48_vm0, 4294967295, %v432_v2  ;;  %vm433_vm2 = vmmov 0   ;;  %vm44_vm3 = vcmask 105472   ;;  %v408_v9 = vld [vmem:[%s546_s3 + $0x8] sm:$0xff]  }
   0x2   :  { %v28_v4 = vld [vmem:[%s545_s0] sm:$0xff]  ;;  %v51_v5 = vsel %vm49_vm1, %v50_v3, 0  ;;  %367 = vmatprep.mubr.msk.bf16.mxu1 %vm433_vm2, %v431_v0  ;;  %399 = vmatprep.mubr.msk.bf16.mxu0 %vm433_vm2, %v431_v0  ;;  %v409_v10 = vld [vmem:[%s546_s3 + $0x10] sm:$0xff]   ;;  %v410_v11 = vld [vmem:[%s546_s3 + $0x18] sm:$0xff]   ;;  %vm142_vm4 = vcmask 523264   ;;  %vm323_vm6 = vcmask 15360  }
   0x3   :  { %v53_v6 = vand.u32 %v406_v1, %v51_v5  ;;  %v29_v7 = vpack.c.bf16 %v28_v4, %v28_v4  ;;  %v407_v8 = vld [vmem:[%s546_s3] sm:$0xff]   ;;  %v412_v25 = vld [vmem:[%s548_s5 + $0x8] sm:$0xff]   ;;  %v413_v26 = vld [vmem:[%s548_s5 + $0x10] sm:$0xff]  }
   0x4   :  { %v329_v12 = vld [vmem:[%s547_s2] ss:$0 sm:$0xff]  ;;  %v414_v27 = vld [vmem:[%s548_s5 + $0x18] sm:$0xff]   ;;  %v416_v29 = vld [vmem:[%s548_s5 + $0x28] sm:$0xff]  }
   0x5   :  { %366 = vmatpush3.bf16.msra.mxu1 %v53_v6  ;;  %v411_v24 = vld [vmem:[%s548_s5] sm:$0xff]   ;;  %v417_v30 = vld [vmem:[%s548_s5 + $0x30] sm:$0xff]   ;;  %v418_v31 = vld [vmem:[%s548_s5 + $0x38] sm:$0xff]  }
   0x6   :  { %371 = vmatprep.subr.bf16.mxu1 %v431_v0  ;;  %384 = vmatpush3.bf16.msra.mxu0 %v411_v24  ;;  %v415_v28 = vld [vmem:[%s548_s5 + $0x20] sm:$0xff]  }
   0x7   :  { %385 = vmatprep.subr.bf16.mxu0 %v431_v0  ;;  %v333_v32 = vld [vmem:[%s549_s4] ss:$0 sm:$0xff] }
   0x8   :  { %368 = vmatmul.mubr.msk.bf16.vlgmr.msra.gmra.mrb[0].mxu1 %vm44_vm3, %v29_v7  ;;  %v340_v44 = vld [vmem:[%s550_s6] ss:$0 sm:$0xff] }
   0x9   :  { %379 = vmatprep.mubr.msk.bf16.mxu1 %vm433_vm2, %v431_v0  ;;  %372 = vmatpush3.bf16.msra.mxu1 %v407_v8 }
   0xa   :  { %373 = vmatprep.subr.bf16.mxu1 %v431_v0  ;;  %386 = vmatpush3.bf16.msra.mxu0 %v412_v25 }
   0xb   :  { %387 = vmatprep.subr.bf16.mxu0 %v431_v0 }
   0xd   :  { %374 = vmatpush3.bf16.msra.mxu1 %v408_v9 }
   0xe   :  { %375 = vmatprep.subr.bf16.mxu1 %v431_v0  ;;  %388 = vmatpush3.bf16.msra.mxu0 %v413_v26 }
   0xf   :  { %389 = vmatprep.subr.bf16.mxu0 %v431_v0 }
  0x11   :  { %376 = vmatpush3.bf16.msra.mxu1 %v409_v10 }
  0x12   :  { %377 = vmatprep.subr.bf16.mxu1 %v431_v0  ;;  %390 = vmatpush3.bf16.msra.mxu0 %v414_v27 }
  0x13   :  { %391 = vmatprep.subr.bf16.mxu0 %v431_v0 }
  0x15   :  { %378 = vmatpush3.bf16.msra.mxu1 %v410_v11 }
  0x16   :  { %392 = vmatpush3.bf16.msra.mxu0 %v415_v28 }
  0x17   :  { %393 = vmatprep.subr.bf16.mxu0 %v431_v0 }
  0x1a   :  { %394 = vmatpush3.bf16.msra.mxu0 %v416_v29 }
  0x1b   :  { %395 = vmatprep.subr.bf16.mxu0 %v431_v0 }
  0x1e   :  { %396 = vmatpush3.bf16.msra.mxu0 %v417_v30 }
  0x1f   :  { %397 = vmatprep.subr.bf16.mxu0 %v431_v0 }
  0x22   :  { %398 = vmatpush3.bf16.msra.mxu0 %v418_v31 }
  0xdb   :  { %v89_v13 = vpop.f32.mrb[0].mxu1 }
  0xdc   :  { %v90_v14 = vadd.f32 %v329_v12, %v89_v13  ;;  %v369_v15 = vpop.f32.mrb[1].mxu1 }
  0xdd   :  { %v92_v16 = vpop.f32.mrb[2].mxu1 }
  0xde   :  { %v95_v17 = vpack.c.bf16 %v90_v14, %v90_v14  ;;  %v370_v18 = vpop.f32.mrb[3].mxu1 }
  0xe0   :  { %v332_v19 = vmul.bf16 3216621497, %v95_v17 }
  0xe2   :  { %419 = vpow.bf16 %v332_v19 }
  0xed   :  { %v420_v20 = vpop.eup %419 }
  0xee   :  { %v100_v21 = vadd.bf16 1065369472, %v420_v20 }
  0xf0   :  { %421 = vrcp.bf16 %v100_v21 }
  0xfb   :  { %v422_v22 = vpop.eup %421 }
  0xfc   :  { %v102_v23 = vmul.bf16 1065369472, %v422_v22 }
  0xfe   :  { %380 = vmatmul.mubr.msk.bf16.vlgmr.msra.gmra.mrb[4].mxu1 %vm142_vm4, %v102_v23 }
 0x1d1   :  { %v180_v33 = vpop.f32.mrb[4].mxu1 }
 0x1d2   :  { %v181_v34 = vadd.f32 %v333_v32, %v180_v33  ;;  %v381_v35 = vpop.f32.mrb[5].mxu1 }
 0x1d3   :  { %v183_v36 = vpop.f32.mrb[6].mxu1 }
 0x1d4   :  { %v186_v37 = vpack.c.bf16 %v181_v34, %v181_v34  ;;  %v382_v38 = vpop.f32.mrb[7].mxu1 }
 0x1d6   :  { %v339_v39 = vmul.bf16 3216621497, %v186_v37 }
 0x1d8   :  { %423 = vpow.bf16 %v339_v39 }
 0x1e3   :  { %v424_v40 = vpop.eup %423 }
 0x1e4   :  { %v191_v41 = vadd.bf16 1065369472, %v424_v40 }
 0x1e6   :  { %425 = vrcp.bf16 %v191_v41 }
 0x1f1   :  { %v426_v42 = vpop.eup %425 }
 0x1f2   :  { %v193_v43 = vmul.bf16 1065369472, %v426_v42 }
 0x1f4   :  { %400 = vmatmul.mubr.bf16.vlgmr.msra.gmra.mrb[0].mxu0 %v193_v43 }
 0x2c7   :  { %v299_v45 = vpop.f32.mrb[0].mxu0 }
 0x2c8   :  { %v300_v46 = vadd.f32 %v340_v44, %v299_v45  ;;  %v401_v47 = vpop.f32.mrb[1].mxu0 }
 0x2c9   :  { %v302_v48 = vpop.f32.mrb[2].mxu0 }
 0x2ca   :  { %v308_v49 = vand.u32 2147483647, %v300_v46  ;;  %v402_v50 = vpop.f32.mrb[3].mxu0  ;;  %v305_v61 = vmax.f32 %v300_v46, 0.0  ;;  %vm306_vm7 = vcmp.ne.f32.partialorder %v300_v46, %v300_v46 }
 0x2cc   :  { %v309_v51 = vsub.f32 0.0, %v308_v49 }
 0x2ce   :  { %v310_v52 = vmul.f32 1.442695, %v309_v51 }
 0x2d0   :  { %427 = vpow2.f32 %v310_v52 }
 0x2da   :  { %v428_v53 = vpop.eup %427 }
 0x2db   :  { %v312_v54 = vadd.f32 1.0, %v428_v53  ;;  %v315_v55 = vmul.f32 -0.5, %v428_v53  ;;  %v318_v57 = vand.u32 2147483647, %v428_v53 }
 0x2dd   :  { %429 = vlog2.f32 %v312_v54  ;;  %v316_v56 = vadd.f32 1.0, %v315_v55  ;;  %vm319_vm5 = vcmp.lt.f32.partialorder %v318_v57, 0.0004427343 }
 0x2df   :  { %v317_v60 = vmul.f32 %v428_v53, %v316_v56 }
 0x2e7   :  { %v430_v58 = vpop.eup %429 }
 0x2e8   :  { %v314_v59 = vmul.f32 0.6931472, %v430_v58 }
 0x2ea   :  { %v320_v62 = vsel %vm319_vm5, %v317_v60, %v314_v59 }
 0x2eb   :  { %v321_v63 = vadd.f32 %v320_v62, %v305_v61 }
 0x2ed   :  { %v322_v0 = vsel %vm306_vm7, %v300_v46, %v321_v63 }
 0x2ee   :  { %324 = vst.msk [vmem:[%s551_s7] sm:$0xff] %vm323_vm6, %v322_v0 }

</bundles_post_ra>
